<compile_context>
chip_gen: v7x
topology: tpu7x:2x2x1
jax: 0.10.0
libtpu: 0.0.40
codegen_flags: <defaults>
</compile_context>

<pallas_src>
import numpy as np
import jax
import jax.numpy as jnp
from jax.experimental import pallas as pl
from jax.experimental.pallas import tpu as pltpu


# ----------------------------------------------------------------------------- helpers (glue)
def _shifted_dft_matrix(n):
    """Matrix G such that G @ x == fftshift(fft(ifftshift(x), norm='ortho')) for length-n x."""
    eye = np.eye(n, dtype=np.complex128)
    return np.fft.fftshift(np.fft.fft(np.fft.ifftshift(eye, axes=0), axis=0, norm="ortho"),
                           axes=0)


# ----------------------------------------------------------------------------- Pallas kernel
def _coil_dft_noise_kernel(img_ref, coil_ref, gh_ref, gw_ref, nz_ref, out_ref):
    # Per grid point (b, cb):
    #   img:  [2, H, W]         packed (real, imag) image plane            (n_mps == 1)
    #   coil: [2, Ct, H, W]     packed coil-sensitivity chunk
    #   gh:   [2, H, H]         shifted ortho DFT matrix along H
    #   gw:   [2, W, Ws]        G_W^T restricted to the sampled k-space columns
    #   nz:   [2, H, Ct*Ws]     per-coil noise tile, already in the output layout
    #   out:  [2, H, Ct*Ws]     lane-dense k-space output (coil folded into lanes)
    ir = img_ref[0]
    ii = img_ref[1]
    cr = coil_ref[0]
    ci = coil_ref[1]
    ct, h, w = cr.shape
    ws = gw_ref.shape[-1]

    # complex_mul(coil, image); n_mps == 1 so the sum over n_mps is the identity.
    xr = (cr * ir[None] - ci * ii[None]).reshape(ct * h, w)      # [Ct*H, W]
    xi = (cr * ii[None] + ci * ir[None]).reshape(ct * h, w)

    # ---- stage 1: W-axis DFT on the sampled columns only, Z = X @ G_W^T[:, cols]
    #      Gauss 3-mult complex matmul: 3 real MXU matmuls instead of 4.
    gwr = gw_ref[0]
    gwi = gw_ref[1]
    p1 = jnp.dot(xr, gwr, preferred_element_type=jnp.float32)
    p2 = jnp.dot(xi, gwi, preferred_element_type=jnp.float32)
    p3 = jnp.dot(xr + xi, gwr + gwi, preferred_element_type=jnp.float32)
    zr = p1 - p2                                                 # [Ct*H, Ws]
    zi = p3 - p1 - p2

    # relayout [Ct, H, Ws] -> [H, Ct*Ws] (minor dim preserved in the transpose) so the second
    # DFT stage is one big lane-dense matmul.
    zr = jnp.transpose(zr.reshape(ct, h, ws), (1, 0, 2)).reshape(h, ct * ws)
    zi = jnp.transpose(zi.reshape(ct, h, ws), (1, 0, 2)).reshape(h, ct * ws)

    # ---- stage 2: H-axis DFT, Y = G_H @ Z (Gauss 3-mult again).
    ghr = gh_ref[0]
    ghi = gh_ref[1]
    q1 = jnp.dot(ghr, zr, preferred_element_type=jnp.float32)
    q2 = jnp.dot(ghi, zi, preferred_element_type=jnp.float32)
    q3 = jnp.dot(ghr + ghi, zr + zi, preferred_element_type=jnp.float32)

    out_ref[0] = (q1 - q2) + nz_ref[0]
    out_ref[1] = (q3 - q1 - q2) + nz_ref[1]


# ----------------------------------------------------------------------------- wrapper
def forward_coil_estimated_noise_covariance(image, coil_est, cholesky_noise_sigma,
                                            rng_noise, mask_np, maximum_likelihood=False,
                                            coil_tile=None):
    """
    image:                 [B, n_mps, H, W, 2]    float32
    coil_est:              [B, n_mps, C, H, W, 2] float32
    cholesky_noise_sigma:  [C, C]                 float32
    rng_noise:             [n_mps, C, H, W, 2]    float32 (stand-in for self.rng.normal_())
    mask_np:               static numpy bool array, broadcastable to y (fastMRI-style)
    coil_tile:             coils per grid step (default: all C).  On v7x (64 MiB VMEM) pick a
                           smaller tile for large images; chunks must stay lane-aligned.
    returns:               [B, C, num_masked_per_(b,c)]
    """
    B, M, H, W, _ = image.shape
    C = coil_est.shape[2]
    # TODO(synk): the PyTorch rng.reshape(C,-1)/broadcast semantics are only well defined for
    # n_mps == 1 (the module default); we implement that case exactly.
    assert M == 1
    f32 = jnp.float32

    ct = C if coil_tile is None else int(coil_tile)
    assert C % ct == 0

    # ---- static mask analysis (mask is a fixed buffer of the module) -----------------------
    mask_b = np.asarray(mask_np, dtype=bool)
    y_full_shape = (B, C, H, W, 2) if maximum_likelihood else (1, B, C, H, W, 2)
    mask_full = np.broadcast_to(mask_b, y_full_shape)
    col_profile = mask_full.reshape(-1, W, 2)[0, :, 0]                       # [W]
    col_struct = np.array_equal(
        mask_full,
        np.broadcast_to(col_profile.reshape((1,) * (mask_full.ndim - 2) + (W, 1)),
                        y_full_shape))
    if col_struct:
        cols = np.flatnonzero(col_profile)
        ws = int(cols.size)
        assert ws > 0
    else:
        # TODO(synk): general (non column-structured) masks keep the XLA gather fallback.
        cols = np.arange(W)
        ws = W

    # ---- shifted ortho-DFT matrices, mask baked into G_W^T (static glue) -------------------
    gh = _shifted_dft_matrix(H)                      # [H, H]
    gwt = _shifted_dft_matrix(W).T[:, cols]          # [W, Ws]  (sampled columns only)
    gh_ri = jnp.asarray(np.stack([gh.real, gh.imag]), f32)       # [2, H, H]
    gw_ri = jnp.asarray(np.stack([gwt.real, gwt.imag]), f32)     # [2, W, Ws]

    # ---- noise term: tiny [C,C]@[C,H*W*2] matmul, done once in plain XLA -------------------
    if maximum_likelihood:
        nz_ri = jnp.zeros((2, H, C * ws), f32)
    else:
        noise_flat = cholesky_noise_sigma.astype(f32) @ rng_noise.reshape(C, -1).astype(f32)
        noise = noise_flat.reshape(M, C, H, W, 2)[0]             # [C, H, W, 2]
        noise = jnp.take(noise, jnp.asarray(cols, dtype=jnp.int32), axis=2)   # [C, H, Ws, 2]
        nz_ri = jnp.transpose(noise, (3, 1, 0, 2)).reshape(2, H, C * ws)      # output layout

    # ---- pack real/imag into a leading size-2 axis (single DMA stream per tensor) ----------
    img_ri = jnp.moveaxis(image.astype(f32), -1, 0)[:, :, 0]      # [2, B, H, W]
    coil_ri = jnp.moveaxis(coil_est.astype(f32), -1, 0)[:, :, 0]  # [2, B, C, H, W]

    # explicit VMEM budget (feedback: raise v5e's 16 MiB default, stay under v7x's 64 MiB)
    block_bytes = 4 * (2 * H * W + 2 * ct * H * W + 2 * H * H + 2 * W * ws
                       + 2 * H * ct * ws + 2 * H * ct * ws)
    vmem_limit = int(min(48 * 1024 * 1024, max(8 * 1024 * 1024, 6 * block_bytes)))

    out_ri = pl.pallas_call(
        _coil_dft_noise_kernel,
        out_shape=jax.ShapeDtypeStruct((2, B, H, C * ws), f32),
        grid_spec=pltpu.PrefetchScalarGridSpec(
            num_scalar_prefetch=0,
            grid=(B, C // ct),
            in_specs=[
                pl.BlockSpec((2, None, H, W), lambda b, cb: (0, b, 0, 0)),          # image
                pl.BlockSpec((2, None, ct, H, W), lambda b, cb: (0, b, cb, 0, 0)),  # coil chunk
                pl.BlockSpec((2, H, H), lambda b, cb: (0, 0, 0)),                   # G_H
                pl.BlockSpec((2, W, ws), lambda b, cb: (0, 0, 0)),                  # G_W^T cols
                pl.BlockSpec((2, H, ct * ws), lambda b, cb: (0, 0, cb)),            # noise tile
            ],
            out_specs=pl.BlockSpec((2, None, H, ct * ws), lambda b, cb: (0, b, 0, cb)),
        ),
        compiler_params=pltpu.CompilerParams(
            dimension_semantics=("parallel", "parallel"),
            vmem_limit_bytes=vmem_limit),
    )(img_ri, coil_ri, gh_ri, gw_ri, nz_ri)

    # [2, B, H, C*Ws] -> [B, C, H, Ws, 2]
    y = jnp.transpose(out_ri.reshape(2, B, H, C, ws), (1, 3, 2, 4, 0))

    if col_struct:
        # boolean column-select == static column slice (already applied inside the kernel)
        return y.reshape(B, C, -1)

    # general-mask fallback: static boolean gather in XLA glue
    if not maximum_likelihood:
        y = y[None]                              # matches noise.unsqueeze(0) broadcast
    sel_idx = np.flatnonzero(mask_full.reshape(-1))
    return y.reshape(-1)[sel_idx].reshape(B, C, -1)


# ----------------------------------------------------------------------------- pure-JAX reference
def reference_forward(image, coil_est, chol, rng_noise, mask_np, maximum_likelihood=False):
    B, M, H, W, _ = image.shape
    C = coil_est.shape[2]
    img_c = image[..., 0] + 1j * image[..., 1]         # [B, M, H, W]
    coil_c = coil_est[..., 0] + 1j * coil_est[..., 1]  # [B, M, C, H, W]
    x = coil_c * img_c[:, :, None]                     # complex_mul(coil, image.unsqueeze(2))
    x = jnp.fft.ifftshift(x, axes=(-2, -1))
    x = jnp.fft.fftn(x, axes=(-2, -1), norm="ortho")
    x = jnp.fft.fftshift(x, axes=(-2, -1))
    y = jnp.sum(x, axis=1)                             # [B, C, H, W] complex
    y_ri = jnp.stack([y.real, y.imag], axis=-1)        # [B, C, H, W, 2]
    if not maximum_likelihood:
        noise_flat = chol @ rng_noise.reshape(C, -1)
        noise = noise_flat.reshape(M, C, H, W, 2)
        y_ri = y_ri[None] + noise[None]                # [1, B, C, H, W, 2]  (M == 1)
    mask_full = np.broadcast_to(np.asarray(mask_np, dtype=bool), y_ri.shape)
    sel_idx = np.flatnonzero(mask_full.reshape(-1))
    return y_ri.reshape(-1)[sel_idx].reshape(B, C, -1)


# ----------------------------------------------------------------------------- main
if __name__ == "__main__":
    B, M, C, H, W = 2, 1, 4, 16, 16
    key = jax.random.PRNGKey(0)
    k1, k2, k3, k4 = jax.random.split(key, 4)

    image = jax.random.normal(k1, (B, M, H, W, 2), jnp.float32)
    coil_est = jax.random.normal(k2, (B, M, C, H, W, 2), jnp.float32)

    # deterministic lower-triangular noise cholesky factor
    a = np.asarray(jax.random.normal(k3, (C, C), jnp.float32), dtype=np.float64)
    cov = 0.01 * (a @ a.T + 0.5 * np.eye(C))
    chol = jnp.asarray(np.linalg.cholesky(cov), jnp.float32)

    # deterministic stand-in for self.rng.normal_()
    rng_noise = jax.random.normal(k4, (M, C, H, W, 2), jnp.float32)

    # fastMRI-style static k-space column mask [1, 1, W, 1]: every other column sampled
    mask_np = np.zeros((1, 1, W, 1), dtype=bool)
    mask_np[..., ::2, :] = True

    out = forward_coil_estimated_noise_covariance(image, coil_est, chol, rng_noise, mask_np)
    out = jax.block_until_ready(out)

    ref = reference_forward(image, coil_est, chol, rng_noise, mask_np)
    assert out.shape == (B, C, H * (W // 2) * 2), out.shape
    np.testing.assert_allclose(np.asarray(out), np.asarray(ref), rtol=2e-3, atol=2e-3)

    print("KERNEL_OK")
</pallas_src>

<mosaic_0001>
module attributes {stable_mosaic.version = 11 : i64} {
  func.func @_coil_dft_noise_kernel(%arg0: i32, %arg1: i32, %arg2: memref<2x1x16x16xf32, #tpu.memory_space<vmem>>, %arg3: memref<2x1x4x16x16xf32, #tpu.memory_space<vmem>>, %arg4: memref<2x16x16xf32, #tpu.memory_space<vmem>>, %arg5: memref<2x16x8xf32, #tpu.memory_space<vmem>>, %arg6: memref<2x16x32xf32, #tpu.memory_space<vmem>>, %arg7: memref<2x1x16x32xf32, #tpu.memory_space<vmem>>) attributes {dimension_semantics = [#tpu.dimension_semantics<parallel>, #tpu.dimension_semantics<parallel>], iteration_bounds = array<i64: 2, 1>, scalar_prefetch = 0 : i64, scratch_operands = 0 : i64, tpu.core_type = #tpu.core_type<tc>, window_params = [{transform_indices = @transform_0, window_bounds = array<i64: 2, 1, 16, 16>}, {transform_indices = @transform_1, window_bounds = array<i64: 2, 1, 4, 16, 16>}, {pipeline_mode = #tpu.pipeline_mode<synchronous>, transform_indices = @transform_2, window_bounds = array<i64: 2, 16, 16>}, {pipeline_mode = #tpu.pipeline_mode<synchronous>, transform_indices = @transform_3, window_bounds = array<i64: 2, 16, 8>}, {transform_indices = @transform_4, window_bounds = array<i64: 2, 16, 32>}, {transform_indices = @transform_5, window_bounds = array<i64: 2, 1, 16, 32>}]} {
    %c0 = arith.constant 0 : index
    %c0_0 = arith.constant 0 : index
    %c0_1 = arith.constant 0 : index
    %c0_2 = arith.constant 0 : index
    %0 = vector.load %arg2[%c0, %c0_0, %c0_1, %c0_2] : memref<2x1x16x16xf32, #tpu.memory_space<vmem>>, vector<1x1x16x16xf32>
    %1 = vector.shape_cast %0 : vector<1x1x16x16xf32> to vector<16x16xf32>
    %c1 = arith.constant 1 : index
    %c0_3 = arith.constant 0 : index
    %c0_4 = arith.constant 0 : index
    %c0_5 = arith.constant 0 : index
    %2 = vector.load %arg2[%c1, %c0_3, %c0_4, %c0_5] : memref<2x1x16x16xf32, #tpu.memory_space<vmem>>, vector<1x1x16x16xf32>
    %3 = vector.shape_cast %2 : vector<1x1x16x16xf32> to vector<16x16xf32>
    %c0_6 = arith.constant 0 : index
    %c0_7 = arith.constant 0 : index
    %c0_8 = arith.constant 0 : index
    %c0_9 = arith.constant 0 : index
    %c0_10 = arith.constant 0 : index
    %4 = vector.load %arg3[%c0_6, %c0_7, %c0_8, %c0_9, %c0_10] : memref<2x1x4x16x16xf32, #tpu.memory_space<vmem>>, vector<1x1x4x16x16xf32>
    %5 = vector.shape_cast %4 : vector<1x1x4x16x16xf32> to vector<4x16x16xf32>
    %c1_11 = arith.constant 1 : index
    %c0_12 = arith.constant 0 : index
    %c0_13 = arith.constant 0 : index
    %c0_14 = arith.constant 0 : index
    %c0_15 = arith.constant 0 : index
    %6 = vector.load %arg3[%c1_11, %c0_12, %c0_13, %c0_14, %c0_15] : memref<2x1x4x16x16xf32, #tpu.memory_space<vmem>>, vector<1x1x4x16x16xf32>
    %7 = vector.shape_cast %6 : vector<1x1x4x16x16xf32> to vector<4x16x16xf32>
    %8 = vector.shape_cast %1 : vector<16x16xf32> to vector<1x16x16xf32>
    %9 = vector.broadcast %8 : vector<1x16x16xf32> to vector<4x16x16xf32>
    %10 = arith.mulf %5, %9 : vector<4x16x16xf32>
    %11 = vector.shape_cast %3 : vector<16x16xf32> to vector<1x16x16xf32>
    %12 = vector.broadcast %11 : vector<1x16x16xf32> to vector<4x16x16xf32>
    %13 = arith.mulf %7, %12 : vector<4x16x16xf32>
    %14 = arith.subf %10, %13 : vector<4x16x16xf32>
    %15 = vector.shape_cast %14 : vector<4x16x16xf32> to vector<64x16xf32>
    %16 = vector.shape_cast %3 : vector<16x16xf32> to vector<1x16x16xf32>
    %17 = vector.broadcast %16 : vector<1x16x16xf32> to vector<4x16x16xf32>
    %18 = arith.mulf %5, %17 : vector<4x16x16xf32>
    %19 = vector.shape_cast %1 : vector<16x16xf32> to vector<1x16x16xf32>
    %20 = vector.broadcast %19 : vector<1x16x16xf32> to vector<4x16x16xf32>
    %21 = arith.mulf %7, %20 : vector<4x16x16xf32>
    %22 = arith.addf %18, %21 : vector<4x16x16xf32>
    %23 = vector.shape_cast %22 : vector<4x16x16xf32> to vector<64x16xf32>
    %c0_16 = arith.constant 0 : index
    %c0_17 = arith.constant 0 : index
    %c0_18 = arith.constant 0 : index
    %24 = vector.load %arg5[%c0_16, %c0_17, %c0_18] : memref<2x16x8xf32, #tpu.memory_space<vmem>>, vector<1x16x8xf32>
    %25 = vector.shape_cast %24 : vector<1x16x8xf32> to vector<16x8xf32>
    %c1_19 = arith.constant 1 : index
    %c0_20 = arith.constant 0 : index
    %c0_21 = arith.constant 0 : index
    %26 = vector.load %arg5[%c1_19, %c0_20, %c0_21] : memref<2x16x8xf32, #tpu.memory_space<vmem>>, vector<1x16x8xf32>
    %27 = vector.shape_cast %26 : vector<1x16x8xf32> to vector<16x8xf32>
    %cst = arith.constant dense<0.000000e+00> : vector<64x8xf32>
    %28 = tpu.matmul %15, %25, %cst {dimension_numbers = #tpu.dot_dimension_numbers<[1], [0], [0], [1], [0, 0, 1, 1], [], []>} : vector<64x16xf32>, vector<16x8xf32>, vector<64x8xf32> -> vector<64x8xf32>
    %cst_22 = arith.constant dense<0.000000e+00> : vector<64x8xf32>
    %29 = tpu.matmul %23, %27, %cst_22 {dimension_numbers = #tpu.dot_dimension_numbers<[1], [0], [0], [1], [0, 0, 1, 1], [], []>} : vector<64x16xf32>, vector<16x8xf32>, vector<64x8xf32> -> vector<64x8xf32>
    %30 = arith.addf %15, %23 : vector<64x16xf32>
    %31 = arith.addf %25, %27 : vector<16x8xf32>
    %cst_23 = arith.constant dense<0.000000e+00> : vector<64x8xf32>
    %32 = tpu.matmul %30, %31, %cst_23 {dimension_numbers = #tpu.dot_dimension_numbers<[1], [0], [0], [1], [0, 0, 1, 1], [], []>} : vector<64x16xf32>, vector<16x8xf32>, vector<64x8xf32> -> vector<64x8xf32>
    %33 = arith.subf %28, %29 : vector<64x8xf32>
    %34 = arith.subf %32, %28 : vector<64x8xf32>
    %35 = arith.subf %34, %29 : vector<64x8xf32>
    %36 = vector.shape_cast %33 : vector<64x8xf32> to vector<4x16x8xf32>
    %37 = tpu.transpose %36, [1, 0, 2] : vector<4x16x8xf32> -> vector<16x4x8xf32>
    %38 = vector.shape_cast %37 : vector<16x4x8xf32> to vector<16x32xf32>
    %39 = vector.shape_cast %35 : vector<64x8xf32> to vector<4x16x8xf32>
    %40 = tpu.transpose %39, [1, 0, 2] : vector<4x16x8xf32> -> vector<16x4x8xf32>
    %41 = vector.shape_cast %40 : vector<16x4x8xf32> to vector<16x32xf32>
    %c0_24 = arith.constant 0 : index
    %c0_25 = arith.constant 0 : index
    %c0_26 = arith.constant 0 : index
    %42 = vector.load %arg4[%c0_24, %c0_25, %c0_26] : memref<2x16x16xf32, #tpu.memory_space<vmem>>, vector<1x16x16xf32>
    %43 = vector.shape_cast %42 : vector<1x16x16xf32> to vector<16x16xf32>
    %c1_27 = arith.constant 1 : index
    %c0_28 = arith.constant 0 : index
    %c0_29 = arith.constant 0 : index
    %44 = vector.load %arg4[%c1_27, %c0_28, %c0_29] : memref<2x16x16xf32, #tpu.memory_space<vmem>>, vector<1x16x16xf32>
    %45 = vector.shape_cast %44 : vector<1x16x16xf32> to vector<16x16xf32>
    %cst_30 = arith.constant dense<0.000000e+00> : vector<16x32xf32>
    %46 = tpu.matmul %43, %38, %cst_30 {dimension_numbers = #tpu.dot_dimension_numbers<[1], [0], [0], [1], [0, 0, 1, 1], [], []>} : vector<16x16xf32>, vector<16x32xf32>, vector<16x32xf32> -> vector<16x32xf32>
    %cst_31 = arith.constant dense<0.000000e+00> : vector<16x32xf32>
    %47 = tpu.matmul %45, %41, %cst_31 {dimension_numbers = #tpu.dot_dimension_numbers<[1], [0], [0], [1], [0, 0, 1, 1], [], []>} : vector<16x16xf32>, vector<16x32xf32>, vector<16x32xf32> -> vector<16x32xf32>
    %48 = arith.addf %43, %45 : vector<16x16xf32>
    %49 = arith.addf %38, %41 : vector<16x32xf32>
    %cst_32 = arith.constant dense<0.000000e+00> : vector<16x32xf32>
    %50 = tpu.matmul %48, %49, %cst_32 {dimension_numbers = #tpu.dot_dimension_numbers<[1], [0], [0], [1], [0, 0, 1, 1], [], []>} : vector<16x16xf32>, vector<16x32xf32>, vector<16x32xf32> -> vector<16x32xf32>
    %51 = arith.subf %46, %47 : vector<16x32xf32>
    %c0_33 = arith.constant 0 : index
    %c0_34 = arith.constant 0 : index
    %c0_35 = arith.constant 0 : index
    %52 = vector.load %arg6[%c0_33, %c0_34, %c0_35] : memref<2x16x32xf32, #tpu.memory_space<vmem>>, vector<1x16x32xf32>
    %53 = vector.shape_cast %52 : vector<1x16x32xf32> to vector<16x32xf32>
    %54 = arith.addf %51, %53 : vector<16x32xf32>
    %c0_36 = arith.constant 0 : index
    %c0_37 = arith.constant 0 : index
    %c0_38 = arith.constant 0 : index
    %c0_39 = arith.constant 0 : index
    %55 = vector.load %arg7[%c0_36, %c0_37, %c0_38, %c0_39] : memref<2x1x16x32xf32, #tpu.memory_space<vmem>>, vector<1x1x16x32xf32>
    %56 = vector.shape_cast %55 : vector<1x1x16x32xf32> to vector<16x32xf32>
    %57 = vector.shape_cast %54 : vector<16x32xf32> to vector<1x1x16x32xf32>
    tpu.vector_store %arg7[%c0_36, %c0_37, %c0_38, %c0_39], %57 {strides = array<i32>} : memref<2x1x16x32xf32, #tpu.memory_space<vmem>>, vector<1x1x16x32xf32>,
    %58 = arith.subf %50, %46 : vector<16x32xf32>
    %59 = arith.subf %58, %47 : vector<16x32xf32>
    %c1_40 = arith.constant 1 : index
    %c0_41 = arith.constant 0 : index
    %c0_42 = arith.constant 0 : index
    %60 = vector.load %arg6[%c1_40, %c0_41, %c0_42] : memref<2x16x32xf32, #tpu.memory_space<vmem>>, vector<1x16x32xf32>
    %61 = vector.shape_cast %60 : vector<1x16x32xf32> to vector<16x32xf32>
    %62 = arith.addf %59, %61 : vector<16x32xf32>
    %c1_43 = arith.constant 1 : index
    %c0_44 = arith.constant 0 : index
    %c0_45 = arith.constant 0 : index
    %c0_46 = arith.constant 0 : index
    %63 = vector.load %arg7[%c1_43, %c0_44, %c0_45, %c0_46] : memref<2x1x16x32xf32, #tpu.memory_space<vmem>>, vector<1x1x16x32xf32>
    %64 = vector.shape_cast %63 : vector<1x1x16x32xf32> to vector<16x32xf32>
    %65 = vector.shape_cast %62 : vector<16x32xf32> to vector<1x1x16x32xf32>
    tpu.vector_store %arg7[%c1_43, %c0_44, %c0_45, %c0_46], %65 {strides = array<i32>} : memref<2x1x16x32xf32, #tpu.memory_space<vmem>>, vector<1x1x16x32xf32>,
    return
  }
  func.func @transform_0(%arg0: i32, %arg1: i32) -> (i32, i32, i32, i32) {
    %c0_i32 = arith.constant 0 : i32
    %c0_i32_0 = arith.constant 0 : i32
    %c0_i32_1 = arith.constant 0 : i32
    %c0_i32_2 = arith.constant 0 : i32
    return %c0_i32, %arg0, %c0_i32_0, %c0_i32_1 : i32, i32, i32, i32
  }
  func.func @transform_1(%arg0: i32, %arg1: i32) -> (i32, i32, i32, i32, i32) {
    %c0_i32 = arith.constant 0 : i32
    %c0_i32_0 = arith.constant 0 : i32
    %c0_i32_1 = arith.constant 0 : i32
    %c0_i32_2 = arith.constant 0 : i32
    return %c0_i32, %arg0, %arg1, %c0_i32_0, %c0_i32_1 : i32, i32, i32, i32, i32
  }
  func.func @transform_2(%arg0: i32, %arg1: i32) -> (i32, i32, i32) {
    %c0_i32 = arith.constant 0 : i32
    %c0_i32_0 = arith.constant 0 : i32
    %c0_i32_1 = arith.constant 0 : i32
    %c0_i32_2 = arith.constant 0 : i32
    return %c0_i32, %c0_i32_0, %c0_i32_1 : i32, i32, i32
  }
  func.func @transform_3(%arg0: i32, %arg1: i32) -> (i32, i32, i32) {
    %c0_i32 = arith.constant 0 : i32
    %c0_i32_0 = arith.constant 0 : i32
    %c0_i32_1 = arith.constant 0 : i32
    %c0_i32_2 = arith.constant 0 : i32
    return %c0_i32, %c0_i32_0, %c0_i32_1 : i32, i32, i32
  }
  func.func @transform_4(%arg0: i32, %arg1: i32) -> (i32, i32, i32) {
    %c0_i32 = arith.constant 0 : i32
    %c0_i32_0 = arith.constant 0 : i32
    %c0_i32_1 = arith.constant 0 : i32
    return %c0_i32, %c0_i32_0, %arg1 : i32, i32, i32
  }
  func.func @transform_5(%arg0: i32, %arg1: i32) -> (i32, i32, i32, i32) {
    %c0_i32 = arith.constant 0 : i32
    %c0_i32_0 = arith.constant 0 : i32
    %c0_i32_1 = arith.constant 0 : i32
    return %c0_i32, %arg0, %c0_i32_0, %arg1 : i32, i32, i32, i32
  }
}

</mosaic_0001>

<bundles_post_ra>
// kernel: tpu_custom_call.1
= control target key start
LH: loop header
LB: loop body
LE: loop exit
PB: predicated region body
PF: predicated region fallthrough
CT: control target
= control target key end

     0   :  { %s2911_s0 = inlined_call_operand.hbm [shape: f32[2,2,16,16], index: 0, kind: input, shape index: {}]   ;;  %s2912_s1 = inlined_call_operand.hbm [shape: f32[2,2,4,16,16], index: 1, kind: input, shape index: {}]   ;;  %s2913_s2 = inlined_call_operand.vmem [shape: f32[2,16,16], index: 2, kind: input, shape index: {}]   ;;  %s2914_s3 = inlined_call_operand.vmem [shape: f32[2,16,8], index: 3, kind: input, shape index: {}]   ;;  %s2915_s4 = inlined_call_operand.hbm [shape: f32[2,16,32], index: 4, kind: input, shape index: {}]   ;;  %s2916_s5 = inlined_call_operand.hbm [shape: f32[2,2,16,32], index: 5, kind: output, shape index: {}]  }
   0x1   :  { %2923 = sst [smem:[#allocation23_spill]] %s2915_s4 }
   0x2   :  { %10 = vsyncpa [#allocation3], 0 }
   0x3   :  { %12 = vsyncpa [#allocation3 + $0x1], 0 }
   0x4   :  { %13 = vsyncpa [#allocation6], 0 }
   0x5   :  { %15 = vsyncpa [#allocation6 + $0x1], 0 }
   0x6   :  { %16 = vsyncpa [#allocation4], 0 }
   0x7   :  { %18 = vsyncpa [#allocation4 + $0x1], 0  ;;  %s2394_s18 = smov 0   ;;  %s2396_s19 = smov 0  }
   0x8   :  { %s2398_s20 = smov 0   ;;  %s2400_s21 = smov 0  }
   0x9   :  { %s2402_s22 = smov 0   ;;  %s2404_s23 = smov 0  }
   0xa LB: > { %s2425_s24 = sadd.s32 4294967295, %s2336_s23   ;;  %s1915_s25 = sadd.s32 4294967294, %s2336_s23   ;;  %s2336_s23 = sphi %s2404_s23, %s24_s23   ;;  %s2332_s22 = sphi %s2402_s22, %s2946_s22   ;;  %s2328_s21 = sphi %s2400_s21, %s2945_s21   ;;  %s2324_s20 = sphi %s2398_s20, %s2944_s20   ;;  %s2320_s19 = sphi %s2396_s19, %s2943_s19   ;;  %s2316_s18 = sphi %s2394_s18, %s2942_s18  }
   0xb   : > { %s36_s26 = sadd.s32 1, %s2332_s22  ;;  %s43_s27 = sadd.s32 1, %s2324_s20 }
   0xc   : > { %p38_p0 = scmp.ge.s32.totalorder %s36_s26, 2  ;;  %p50_p1 = scmp.ne.s32.totalorder %s2324_s20, %s2320_s19 }
   0xd   : > { %p51_p2 = scmp.eq.s32.totalorder %s2336_s23, 0  ;;  %p56_p3 = scmp.ne.s32.totalorder %s2320_s19, %s2316_s18 }
   0xe   : > { %s2948_s26 = smov (%p38_p0, %s36_s26), 0  ;;  %p2917_p5 = scmp.eq.s32.totalorder %s2425_s24, 0 }
   0xf   : > { %2924 = sst [smem:[#allocation21_spill]] %s2948_s26  ;;  %p2437_p4 = por %p51_p2, %p50_p1 }
  0x10   : > { %s40_s29 = ssub.s32 %s2332_s22, %s2948_s26  ;;  %p178_p6 = scmp.eq.s32.totalorder %s2425_s24, 1 }
  0x11   : > { %s2925_s28 = scalar_select %p2437_p4, 1, 0 }
  0x12   : > { %p41_p7 = scmp.eq.s32.totalorder %s40_s29, 0  ;;  %p2447_p8 = por %p2917_p5, %p56_p3 }
  0x13   : > { %p2451_p9 = por %p178_p6, %p50_p1  ;;  %p184_p10 = scmp.eq.s32.totalorder %s1915_s25, 1 }
  0x14   : > { %s2926_s30 = scalar_select %p2447_p8, 1, 0 }
  0x15   : > { %s2927_s6 = scalar_select %p2451_p9, 1, 0 }
  0x16   : > { %s2456_s7 = scalar_select %p41_p7, %s2324_s20, %s43_s27  }
  0x17   : > { %p2458_p11 = por %p184_p10, %p56_p3  ;;  %p1916_p12 = scmp.ge.s32.totalorder %s2336_s23, 1 }
  0x18   : > { %2928 = sst [smem:[#allocation22_spill]] %s2456_s7  ;;  %p191_p13 = scmp.lt.s32.totalorder %s2336_s23, 3 }
  0x19   : > { %s2929_s8 = scalar_select %p2458_p11, 1, 0 }
  0x1a   : > { %p2464_p0 = pnand %p1916_p12, %p191_p13  ;;  %s2338_s10 = smov [#allocation7]  }
  0x1b   : > { %s211_s11 = sshll.u32 %s2338_s10, 4  ;;  %s2932_s4 = sld [smem:[#allocation23_spill]]  ;;  %s212_s11 = int_to_ptr.vmem [resolvable:$true] %s211_s11 }
  0x1c   : > { %s2930_s9 = scalar_select %p2464_p0, 1, 0 }
  0x1d   : > { %p2161_p1 = pneg %p2464_p0 }
  0x1f   : > { %p2472_p2 = pnand %p2161_p1, %p2917_p5 }
  0x21   : > { %s2246_s15 = scalar_lea.hbm %s2932_s4, 512  ;;  %p2248_p6 = pneg %p2472_p2 }
  0x22   : > { %p2247_p3 = scmp.ne.s32.totalorder %s2932_s4, %s2246_s15  ;;  %p2253_p12 = scmp.lt.u32.totalorder %s2246_s15, %s2932_s4 }
  0x24   : > { %p2249_p7 = pnand %p2248_p6, %p2247_p3 }
  0x26   : > { %p2250_p10 = pneg %p2249_p7 }
  0x28   : > { %p2255_p13 = pnand %p2253_p12, %p2250_p10 }
  0x2a   : > { %2258 = shalt.err (!%p2255_p13)
}
  0x2b   : > { %s2259_s29 = scalar_lea.vmem %s212_s11, 512  ;;  %p2267_p9 = scmp.lt.s32.totalorder %s212_s11, %s212_s11 }
  0x2c   : > { %p2260_p1 = scmp.ne.s32.totalorder %s212_s11, %s2259_s29  ;;  %p2268_p8 = scmp.lt.s32.totalorder %s2259_s29, %s2259_s29 }
  0x2e   : > { %p2262_p5 = pnand %p2260_p1, %p2248_p6  ;;  %p2269_p0 = por %p2268_p8, %p2267_p9 }
  0x30   : > { %p2263_p11 = pneg %p2262_p5 }
  0x32   : > { %p2270_p4 = pnand %p2269_p0, %p2263_p11 }
  0x34   : > { %2273 = shalt.err (!%p2270_p4)
}
  0x35   : > { %s2339_s10 = smov 128   ;;  %s2340_s13 = smov 8  }
  0x36   : > { %2164 = dma.hbm_to_vmem [thread:$0]  (!%p2472_p2), %s2932_s4, 512, %s212_s11, [#allocation6], %s2339_s10, %s2339_s10, %s2340_s13  }
  0x37   : > { %p1918_p3 = scmp.ge.s32.totalorder %s2336_s23, 2 }
  0x39   : > { %221 = sbr.rel (%p1918_p3) target bundleno = 93 (0x5d), region = 28 }
  0x40   : > { %s225_s15 = sand.u32 1, %s2324_s20   ;;  %s1993_s17 = sshll.u32 %s2332_s22, 8 }
  0x41   : > { %s1919_s12 = sshll.u32 %s225_s15, 5  ;;  %s235_s11 = scalar_lea.hbm %s2911_s0, %s1993_s17 }
  0x42   : > { %p2933_p4 = scmp.ne.s32.totalorder %s2925_s28, 0  ;;  %s229_s10 = scalar_lea.vmem [#allocation2], %s1919_s12 }
  0x43   : > { %s248_s13 = sshll.u32 %s229_s10, 4  ;;  %s2341_s16 = smov 512   ;;  %s249_s13 = int_to_ptr.vmem [resolvable:$true] %s248_s13 }
  0x44   : > { %s2133_s29 = scalar_select %p2933_p4, [#allocation0], [#allocation15] }
  0x45   : > { %2134 = sst [smem:[#allocation10]] (%p2933_p4), %s2341_s16  ;;  %s2342_s4 = smov 256  }
  0x46   : > { %s240_s14 = sld [smem:[%s2133_s29]]   ;;  %s2343_s26 = smov 2  }
  0x47   : > { %2135 = sst [smem:[#allocation10 + $0x1]] (%p2933_p4), %s2342_s4  ;;  %s2344_s7 = smov 128  }
  0x48   : > { %2136 = sst [smem:[#allocation10 + $0x2]] (%p2933_p4), %s2343_s26  ;;  %s2345_s12 = smov 8  }
  0x49   : > { %2137 = sst [smem:[#allocation10 + $0x3]] (%p2933_p4), %s2344_s7  ;;  %s226_s27 = scalar_lea.sflag [#allocation3], %s225_s15 }
  0x4a   : > { %2138 = sst [smem:[#allocation10 + $0x4]] (%p2933_p4), %s2344_s7  ;;  %s2346_s29 = smov [#allocation9]  }
  0x4b   : > { %2139 = sst [smem:[#allocation10 + $0x5]] (%p2933_p4), %s2345_s12 }
  0x4c   : > { %s1922_s17 = sshll.u32 %s240_s14, 26 }
  0x4d   : > { %s1923_s25 = sadd.s32 134217728, %s1922_s17 }
  0x4e   : > { %2140 = dma.general (%p2933_p4), %s235_s11, 512, %s249_s13, %s226_s27, %s2346_s29, [#allocation10], %s1923_s25, 0  }
  0x4f   : > { %s271_s4 = sand.u32 1, %s2336_s23   ;;  %s1924_s26 = sshll.u32 %s225_s15, 7 }
  0x50   : > { %s1994_s7 = sshll.u32 %s2332_s22, 10  ;;  %s275_s10 = scalar_lea.vmem [#allocation5], %s1924_s26 }
  0x51   : > { %s297_s14 = sshll.u32 %s275_s10, 4  ;;  %s2347_s12 = smov 2048   ;;  %s298_s14 = int_to_ptr.vmem [resolvable:$true] %s297_s14 }
  0x52   : > { %s2141_s16 = scalar_select %p2933_p4, [#allocation0], [#allocation16] }
  0x53   : > { %2142 = sst [smem:[#allocation12]] (%p2933_p4), %s2347_s12  ;;  %s2348_s11 = smov 1024  }
  0x54   : > { %s289_s17 = sld [smem:[%s2141_s16]]   ;;  %s2349_s13 = smov 8  }
  0x55   : > { %2143 = sst [smem:[#allocation12 + $0x1]] (%p2933_p4), %s2348_s11  ;;  %s284_s27 = scalar_lea.hbm %s2912_s1, %s1994_s7 }
  0x56   : > { %2144 = sst [smem:[#allocation12 + $0x2]] (%p2933_p4), %s2349_s13  ;;  %s2350_s29 = smov 128  }
  0x57   : > { %2145 = sst [smem:[#allocation12 + $0x3]] (%p2933_p4), %s2350_s29  ;;  %s272_s16 = scalar_lea.sflag [#allocation6], %s271_s4 }
  0x58   : > { %2146 = sst [smem:[#allocation12 + $0x4]] (%p2933_p4), %s2350_s29  ;;  %s2351_s12 = smov [#allocation11]  }
  0x59   : > { %2147 = sst [smem:[#allocation12 + $0x5]] (%p2933_p4), %s2349_s13 }
  0x5a   : > { %s1927_s26 = sshll.u32 %s289_s17, 26 }
  0x5b   : > { %s1928_s10 = sadd.s32 134217728, %s1927_s26 }
  0x5c   : > { %2148 = dma.general (%p2933_p4), %s284_s27, 2048, %s298_s14, %s272_s16, %s2351_s12, [#allocation12], %s1928_s10, 0  }
  0x5d PF: > { %p2934_p5 = scmp.ne.s32.totalorder %s2930_s9, 0 }
  0x5e   : > { %s2540_s7 = sand.u32 (!%p2934_p5), 1, %s2320_s19   ;;  %p2935_p8 = scmp.ne.s32.totalorder (!%p2934_p5), %s2926_s30, 0 }
  0x5f   : > { %322 = sbr.rel (%p2934_p5) target bundleno = 754 (0x2f2), region = 40  ;;  %s1930_s11 = sshll.u32 (!%p2934_p5), %s2540_s7, 5 }
  0x60   : > { %s325_s25 = scalar_lea.sflag (!%p2934_p5), [#allocation3], %s2540_s7  ;;  %s328_s17 = scalar_lea.vmem (!%p2934_p5), [#allocation2], %s1930_s11 }
  0x66   : > { %2299 = dma.done.wait (%p2935_p8), %s325_s25, 512  }
  0x67   : > { %2301 = vsyncadd (%p2935_p8), %s325_s25, 4294966784  ;;  %s333_s28 = sand.u32 1, %s2425_s24   ;;  %s1931_s9 = sshll.u32 %s2540_s7, 7 }
  0x68   : > { %s334_s4 = scalar_lea.sflag [#allocation6], %s333_s28  ;;  %s2552_s14 = scalar_lea.vmem [#allocation5], %s1931_s9 }
  0x69   : > { %2303 = dma.done.wait (%p2935_p8), %s334_s4, 2048  }
  0x6a   : > { %2305 = vsyncadd (%p2935_p8), %s334_s4, 4294965248  ;;  %p2936_p9 = scmp.eq.s32.totalorder %s2425_s24, 0 }
  0x6c   : > { %2307 = dma.done.wait (%p2936_p9), [#allocation6], 512   ;;  %p2937_p11 = pmov %p2936_p9 }
  0x6d   : > { %v444_v0 = vld [vmem:[%s2914_s3] sm:$0xff]  ;;  %v445_v1 = vld [vmem:[%s2914_s3 + $0x8] sm:$0xff]  ;;  %v1944_v2 = vld [vmem:[%s2914_s3 + $0x10] sm:$0xff]  ;;  %vm449_vm0 = vcmask 130048   ;;  %s2354_s24 = smov 16   ;;  %s2355_s12 = smov 8  }
  0x6e   : > { %2309 = vsyncadd (%p2937_p11), [#allocation6], 4294966784  ;;  %v2107_v3 = vpack.c.bf16 %v445_v1, %v444_v0  ;;  %v1945_v4 = vld [vmem:[%s2914_s3 + $0x18] sm:$0xff]  ;;  %v716_v5 = vadd.f32 %v1944_v2, %v444_v0  ;;  %v2574_v6 = vld [vmem:[%s328_s17] sm:$0xff]  ;;  %s2356_s25 = smov 24   ;;  %vm1167_vm1 = vcmask 64512  }
  0x6f   : > { %v2576_v7 = vld [vmem:[%s328_s17 + $0x10] sm:$0xff]  ;;  %v2111_v8 = vpack.c.bf16 %v1945_v4, %v1944_v2  ;;  %v717_v9 = vadd.f32 %v1945_v4, %v445_v1  ;;  %v379_v10 = vld [vmem:[%s2552_s14] sm:$0xff]  ;;  %v2580_v12 = vld [vmem:[%s328_s17 + $0x8] sm:$0xff]  ;;  %vm1172_vm2 = vcmask 195584   ;;  %vm1735_vm3 = vcmask 261120   ;;  %s372_s29 = scalar_lea.vmem [#allocation8], %s1930_s11 }
  0x70   : > { %v1936_v11 = vld [vmem:[%s2552_s14 + $0x40] sm:$0xff]  ;;  %2108 = vmatprep.subr.bf16.mxu0 %v2107_v3  ;;  %v396_v13 = vmul.f32 %v379_v10, %v2574_v6  ;;  %v420_v15 = vmul.f32 %v2576_v7, %v379_v10  ;;  %v2586_v17 = vld [vmem:[%s328_s17 + $0x18] sm:$0xff]  ;;  %v380_v18 = vld [vmem:[%s2552_s14 + $0x8] sm:$0xff]  ;;  %s1751_s26 = scalar_lea.sflag [#allocation4], %s2540_s7 }
  0x71   : > { %v404_v14 = vmul.f32 %v1936_v11, %v2576_v7  ;;  %v428_v16 = vmul.f32 %v1936_v11, %v2574_v6  ;;  %v1937_v19 = vld [vmem:[%s2552_s14 + $0x48] sm:$0xff]  ;;  %2112 = vmatprep.subr.bf16.mxu1 %v2111_v8  ;;  %2110 = vmatpush3.bf16.msra.mxu0 %v2107_v3  ;;  %v397_v20 = vmul.f32 %v380_v18, %v2580_v12  ;;  %v381_v23 = vld [vmem:[%s2552_s14 + $0x10] sm:$0xff]  ;;  %v382_v29 = vld [vmem:[%s2552_s14 + $0x18] sm:$0xff] }
  0x72   : > { %v405_v21 = vmul.f32 %v1937_v19, %v2586_v17  ;;  %v421_v22 = vmul.f32 %v2586_v17, %v380_v18  ;;  %v1938_v24 = vld [vmem:[%s2552_s14 + $0x50] sm:$0xff]  ;;  %2114 = vmatpush3.bf16.msra.mxu1 %v2111_v8  ;;  %v429_v27 = vmul.f32 %v1937_v19, %v2580_v12  ;;  %v2115_v28 = vpack.c.bf16 %v717_v9, %v716_v5  ;;  %v1939_v30 = vld [vmem:[%s2552_s14 + $0x58] sm:$0xff]  ;;  %v383_v37 = vld [vmem:[%s2552_s14 + $0x20] sm:$0xff] }
  0x73   : > { %v2595_v25 = vsub.f32 %v396_v13, %v404_v14  ;;  %v436_v26 = vadd.f32 %v428_v16, %v420_v15  ;;  %v398_v32 = vmul.f32 %v381_v23, %v2574_v6  ;;  %v406_v33 = vmul.f32 %v1938_v24, %v2576_v7  ;;  %v1940_v38 = vld [vmem:[%s2552_s14 + $0x60] sm:$0xff]  ;;  %v384_v42 = vld [vmem:[%s2552_s14 + $0x28] sm:$0xff]  ;;  %v385_v50 = vld [vmem:[%s2552_s14 + $0x30] sm:$0xff] }
  0x74   : > { %v2600_v31 = vsub.f32 %v397_v20, %v405_v21  ;;  %v422_v34 = vmul.f32 %v2576_v7, %v381_v23  ;;  %v437_v35 = vadd.f32 %v429_v27, %v421_v22  ;;  %v430_v36 = vmul.f32 %v1938_v24, %v2574_v6  ;;  %2116 = vmatprep.subr.bf16.mxu0 %v2115_v28  ;;  %v1941_v43 = vld [vmem:[%s2552_s14 + $0x68] sm:$0xff]  ;;  %v1942_v51 = vld [vmem:[%s2552_s14 + $0x70] sm:$0xff]  ;;  %v386_v60 = vld [vmem:[%s2552_s14 + $0x38] sm:$0xff] }
  0x75   : > { %2042 = vmatprep.mubr.msk.f32.mxu0 %vm449_vm0, %v2595_v25  ;;  %2058 = vmatprep.mubr.msk.f32.mxu1 %vm449_vm0, %v436_v26  ;;  %v414_v39 = vsub.f32 %v398_v32, %v406_v33  ;;  %v399_v40 = vmul.f32 %v382_v29, %v2580_v12  ;;  %v407_v41 = vmul.f32 %v1939_v30, %v2586_v17  ;;  %v1943_v61 = vld [vmem:[%s2552_s14 + $0x78] sm:$0xff] }
  0x76   : > { %2043 = vmatmul.mubr.msk.f32.vlgmr.msra.gmra.mrb[0].mxu0 %vm449_vm0, %v2600_v31  ;;  %2059 = vmatmul.mubr.msk.f32.vlgmr.msra.gmra.mrb[0].mxu1 %vm449_vm0, %v437_v35  ;;  %v438_v44 = vadd.f32 %v430_v36, %v422_v34  ;;  %v423_v45 = vmul.f32 %v2586_v17, %v382_v29  ;;  %v431_v47 = vmul.f32 %v1939_v30, %v2580_v12  ;;  %v2352_v29 = vmov 1983009808  }
  0x77   : > { %2118 = vmatpush3.bf16.msra.mxu0 %v2115_v28  ;;  %2045 = vmatprep.mubr.msk.f32.mxu0 %vm449_vm0, %v414_v39  ;;  %v415_v46 = vsub.f32 %v399_v40, %v407_v41  ;;  %v400_v48 = vmul.f32 %v383_v37, %v2574_v6  ;;  %v408_v49 = vmul.f32 %v1940_v38, %v2576_v7  ;;  %v874_v30 = vunpack.c.l.s4 %v2352_v29 }
  0x78   : > { %2061 = vmatprep.mubr.msk.f32.mxu1 %vm449_vm0, %v438_v44  ;;  %v424_v52 = vmul.f32 %v2576_v7, %v383_v37  ;;  %v432_v53 = vmul.f32 %v1940_v38, %v2574_v6  ;;  %v401_v54 = vmul.f32 %v384_v42, %v2580_v12  ;;  %v409_v55 = vmul.f32 %v1941_v43, %v2586_v17 }
  0x79   : > { %v439_v56 = vadd.f32 %v431_v47, %v423_v45  ;;  %v416_v57 = vsub.f32 %v400_v48, %v408_v49  ;;  %v425_v58 = vmul.f32 %v2586_v17, %v384_v42  ;;  %v433_v59 = vmul.f32 %v1941_v43, %v2580_v12 }
  0x7a   : > { %2046 = vmatmul.mubr.msk.f32.gmra.mrb[2].mxu0 %vm449_vm0, %v415_v46  ;;  %v440_v62 = vadd.f32 %v432_v53, %v424_v52  ;;  %v417_v63 = vsub.f32 %v401_v54, %v409_v55  ;;  %v402_v0 = vmul.f32 %v385_v50, %v2574_v6  ;;  %v410_v1 = vmul.f32 %v1942_v51, %v2576_v7 }
  0x7b   : > { %2062 = vmatmul.mubr.msk.f32.gmra.mrb[2].mxu1 %vm449_vm0, %v439_v56  ;;  %2048 = vmatprep.mubr.msk.f32.mxu0 %vm449_vm0, %v416_v57  ;;  %v441_v2 = vadd.f32 %v433_v59, %v425_v58  ;;  %v426_v3 = vmul.f32 %v2576_v7, %v385_v50  ;;  %v434_v4 = vmul.f32 %v1942_v51, %v2574_v6  ;;  %v2353_v37 = vmov 1934713408  }
  0x7c   : > { %2064 = vmatprep.mubr.msk.f32.mxu1 %vm449_vm0, %v440_v62  ;;  %v418_v5 = vsub.f32 %v402_v0, %v410_v1  ;;  %v403_v8 = vmul.f32 %v386_v60, %v2580_v12  ;;  %v411_v9 = vmul.f32 %v1943_v61, %v2586_v17  ;;  %v427_v10 = vmul.f32 %v2586_v17, %v386_v60 }
  0x7d   : > { %v442_v11 = vadd.f32 %v434_v4, %v426_v3  ;;  %v435_v13 = vmul.f32 %v1943_v61, %v2580_v12  ;;  %v708_v14 = vadd.f32 %v436_v26, %v2595_v25  ;;  %v709_v15 = vadd.f32 %v437_v35, %v2600_v31 }
  0x7e   : > { %2049 = vmatmul.mubr.msk.f32.gmra.mrb[4].mxu0 %vm449_vm0, %v417_v63  ;;  %v419_v7 = vsub.f32 %v403_v8, %v411_v9  ;;  %v710_v16 = vadd.f32 %v438_v44, %v414_v39  ;;  %v711_v12 = vadd.f32 %v439_v56, %v415_v46  ;;  %v712_v17 = vadd.f32 %v440_v62, %v416_v57 }
  0x7f   : > { %2051 = vmatprep.mubr.msk.f32.mxu0 %vm449_vm0, %v418_v5  ;;  %2065 = vmatmul.mubr.msk.f32.gmra.mrb[4].mxu1 %vm449_vm0, %v441_v2  ;;  %v443_v6 = vadd.f32 %v435_v13, %v427_v10  ;;  %v713_v18 = vadd.f32 %v441_v2, %v417_v63  ;;  %v714_v19 = vadd.f32 %v442_v11, %v418_v5  ;;  %v876_v31 = vlaneseq }
  0x80   : > { %2067 = vmatprep.mubr.msk.f32.mxu1 %vm449_vm0, %v442_v11  ;;  %v906_v38 = vunpack.c.l.s4 %v2353_v37  ;;  %v875_v39 = vunpack.c.0.s8 %v874_v30 }
  0x81   : > { %v715_v20 = vadd.f32 %v443_v6, %v419_v7  ;;  %v877_v40 = vshrl.u32 %v876_v31, 7 }
  0x82   : > { %2052 = vmatmul.mubr.msk.f32.gmra.mrb[6].mxu0 %vm449_vm0, %v419_v7  ;;  %v907_v47 = vunpack.c.0.s8 %v906_v38 }
  0x83   : > { %2074 = vmatprep.mubr.msk.f32.mxu0 %vm449_vm0, %v708_v14  ;;  %2068 = vmatmul.mubr.msk.f32.gmra.mrb[6].mxu1 %vm449_vm0, %v443_v6  ;;  %v2688_v48 = vsub.s32 %v875_v39, %v877_v40 }
  0x84   : > { %v2698_v57 = vsub.s32 %v907_v47, %v877_v40 }
  0x86   : > { %2075 = vmatmul.mubr.msk.f32.vlgmr.msra.gmra.mrb[8].mxu0 %vm449_vm0, %v709_v15 }
  0x87   : > { %2077 = vmatprep.mubr.msk.f32.mxu0 %vm449_vm0, %v710_v16 }
  0x8a   : > { %2078 = vmatmul.mubr.msk.f32.gmra.mrb[10].mxu0 %vm449_vm0, %v711_v12 }
  0x8b   : > { %2080 = vmatprep.mubr.msk.f32.mxu0 %vm449_vm0, %v712_v17 }
  0x8e   : > { %2081 = vmatmul.mubr.msk.f32.gmra.mrb[12].mxu0 %vm449_vm0, %v713_v18 }
  0x8f   : > { %2083 = vmatprep.mubr.msk.f32.mxu0 %vm449_vm0, %v714_v19 }
  0x92   : > { %2084 = vmatmul.mubr.msk.f32.gmra.mrb[14].mxu0 %vm449_vm0, %v715_v20 }
 0x149   : > { %v2044_v21 = vpop.f32.mrb[0].mxu0  ;;  %v2060_v22 = vpop.f32.mrb[0].mxu1 }
 0x14a   : > { %v540_v23 = vpop.f32.mrb[1].mxu0  ;;  %v848_v24 = vsub.f32 %v2044_v21, %v2060_v22  ;;  %v669_v25 = vpop.f32.mrb[1].mxu1 }
 0x14b   : > { %v847_v26 = vsub.f32 %v540_v23, %v669_v25 }
 0x14d   : > { %v2662_v27 = vpop.f32.mrb[2].mxu0 }
 0x14e   : > { %v2664_v28 = vpop.f32.mrb[3].mxu0  ;;  %v2666_v32 = vpop.f32.mrb[2].mxu1 }
 0x14f   : > { %v850_v33 = vsub.f32 %v2662_v27, %v2666_v32  ;;  %v2670_v34 = vpop.f32.mrb[3].mxu1 }
 0x150   : > { %v849_v35 = vsub.f32 %v2664_v28, %v2670_v34 }
 0x151   : > { %v2674_v36 = vpop.f32.mrb[4].mxu0 }
 0x152   : > { %v2676_v41 = vpop.f32.mrb[5].mxu0  ;;  %v2678_v42 = vpop.f32.mrb[4].mxu1 }
 0x153   : > { %v852_v43 = vsub.f32 %v2674_v36, %v2678_v42  ;;  %v2682_v44 = vpop.f32.mrb[5].mxu1 }
 0x154   : > { %v851_v45 = vsub.f32 %v2676_v41, %v2682_v44 }
 0x155   : > { %v2686_v46 = vpop.f32.mrb[6].mxu0  ;;  %v939_v49 = vcombine.low %v848_v24, %v852_v43  ;;  %v940_v50 = vcombine.high %v848_v24, %v852_v43 }
 0x156   : > { %v2690_v51 = vpop.f32.mrb[7].mxu0  ;;  %v871_v52 = vcombine.low %v847_v26, %v851_v45  ;;  %v872_v53 = vcombine.high %v847_v26, %v851_v45  ;;  %v2692_v54 = vpop.f32.mrb[6].mxu1 }
 0x157   : > { %v854_v55 = vsub.f32 %v2686_v46, %v2692_v54  ;;  %v2696_v56 = vpop.f32.mrb[7].mxu1  ;;  %v947_v60 = vrot.slane %v939_v49, %v2688_v48  ;;  %v954_v1 = vrot.slane %v940_v50, %v2688_v48 }
 0x158   : > { %v853_v58 = vsub.f32 %v2690_v51, %v2696_v56  ;;  %v879_v5 = vrot.slane %v871_v52, %v2688_v48  ;;  %v886_v11 = vrot.slane %v872_v53, %v2688_v48 }
 0x159   : > { %v2076_v59 = vpop.f32.mrb[8].mxu0  ;;  %v955_v61 = vcombine.low %v850_v33, %v854_v55  ;;  %v956_v62 = vcombine.high %v850_v33, %v854_v55 }
 0x15a   : > { %v856_v63 = vsub.f32 %v2076_v59, %v2044_v21  ;;  %v808_v0 = vpop.f32.mrb[9].mxu0  ;;  %v887_v2 = vcombine.low %v849_v35, %v853_v58  ;;  %v888_v3 = vcombine.high %v849_v35, %v853_v58 }
 0x15b   : > { %v855_v4 = vsub.f32 %v808_v0, %v540_v23  ;;  %v963_v8 = vrot.slane %v955_v61, %v2688_v48  ;;  %v970_v9 = vrot.slane %v956_v62, %v2688_v48 }
 0x15c   : > { %v864_v10 = vsub.f32 %v856_v63, %v2060_v22  ;;  %v895_v13 = vrot.slane %v887_v2, %v2688_v48  ;;  %v902_v14 = vrot.slane %v888_v3, %v2688_v48 }
 0x15d   : > { %v863_v7 = vsub.f32 %v855_v4, %v669_v25  ;;  %v2079_v6 = vpop.f32.mrb[10].mxu0  ;;  %v971_v15 = vcombine.low %v947_v60, %v963_v8  ;;  %v972_v16 = vcombine.high %v947_v60, %v963_v8  ;;  %v987_v12 = vcombine.low %v954_v1, %v970_v9 }
 0x15e   : > { %v988_v17 = vcombine.high %v954_v1, %v970_v9  ;;  %v818_v18 = vpop.f32.mrb[11].mxu0  ;;  %v903_v19 = vcombine.low %v879_v5, %v895_v13  ;;  %v904_v20 = vcombine.high %v879_v5, %v895_v13  ;;  %v919_v21 = vcombine.low %v886_v11, %v902_v14 }
 0x15f   : > { %v920_v23 = vcombine.high %v886_v11, %v902_v14  ;;  %v979_v24 = vrot.slane %v971_v15, %v2698_v57  ;;  %v986_v22 = vrot.slane %v972_v16, %v2698_v57  ;;  %v995_v26 = vrot.slane %v987_v12, %v2698_v57 }
 0x160   : > { %v1002_v29 = vrot.slane %v988_v17, %v2698_v57  ;;  %v2715_v25 = vrot.slane %v903_v19, %v2698_v57  ;;  %v2718_v30 = vrot.slane %v904_v20, %v2698_v57  ;;  %v2721_v31 = vrot.slane %v919_v21, %v2698_v57 }
 0x161   : > { %v2724_v33 = vrot.slane %v920_v23, %v2698_v57  ;;  %v2082_v35 = vpop.f32.mrb[12].mxu0  ;;  %v858_v37 = vsub.f32 %v2079_v6, %v2662_v27  ;;  %v857_v38 = vsub.f32 %v818_v18, %v2664_v28  ;;  %v1075_v43 = vcombine.low %v979_v24, %v986_v22 }
 0x162   : > { %v860_v39 = vsub.f32 %v2082_v35, %v2674_v36  ;;  %v828_v40 = vpop.f32.mrb[13].mxu0  ;;  %v1007_v45 = vcombine.low %v2715_v25, %v2718_v30  ;;  %v1970_v47 = vcombine.high %v2715_v25, %v2718_v30  ;;  %v1972_v58 = vcombine.high %v979_v24, %v986_v22 }
 0x163   : > { %v1023_v49 = vcombine.low %v2721_v31, %v2724_v33  ;;  %v1971_v50 = vcombine.high %v2721_v31, %v2724_v33  ;;  %v866_v27 = vsub.f32 %v858_v37, %v2666_v32  ;;  %v865_v28 = vsub.f32 %v857_v38, %v2670_v34 }
 0x164   : > { %v868_v36 = vsub.f32 %v860_v39, %v2678_v42  ;;  %v859_v52 = vsub.f32 %v828_v40, %v2676_v41  ;;  %v1082_v55 = vrot.slane %v1075_v43, %v2688_v48  ;;  %v1091_v59 = vcombine.low %v995_v26, %v1002_v29 }
 0x165   : > { %v2085_v53 = vpop.f32.mrb[14].mxu0  ;;  %v1973_v60 = vcombine.high %v995_v26, %v1002_v29  ;;  %v1090_v34 = vrot.slane %v1972_v58, %v2688_v48 }
 0x166   : > { %v1243_v61 = vcombine.low %v864_v10, %v868_v36  ;;  %v1244_v62 = vcombine.high %v864_v10, %v868_v36  ;;  %v867_v63 = vsub.f32 %v859_v52, %v2682_v44  ;;  %v862_v0 = vsub.f32 %v2085_v53, %v2686_v46  ;;  %v838_v1 = vpop.f32.mrb[15].mxu0 }
 0x167   : > { %v861_v32 = vsub.f32 %v838_v1, %v2690_v51  ;;  %v1098_v42 = vrot.slane %v1091_v59, %v2688_v48  ;;  %v1106_v41 = vrot.slane %v1973_v60, %v2688_v48  ;;  %v1108_v46 = vcombine.high %v1082_v55, %v1090_v34 }
 0x168   : > { %v1251_v2 = vrot.slane %v1243_v61, %v2688_v48  ;;  %v1258_v3 = vrot.slane %v1244_v62, %v2688_v48  ;;  %v1175_v4 = vcombine.low %v863_v7, %v867_v63  ;;  %v1176_v5 = vcombine.high %v863_v7, %v867_v63 }
 0x169   : > { %v870_v8 = vsub.f32 %v862_v0, %v2692_v54  ;;  %v869_v44 = vsub.f32 %v861_v32, %v2696_v56  ;;  %v1124_v9 = vcombine.high %v1098_v42, %v1106_v41  ;;  %v1107_v11 = vcombine.low %v1082_v55, %v1090_v34 }
 0x16a   : > { %v1183_v51 = vrot.slane %v1175_v4, %v2688_v48  ;;  %v1190_v10 = vrot.slane %v1176_v5, %v2688_v48  ;;  %v1123_v13 = vcombine.low %v1098_v42, %v1106_v41  ;;  %v1122_v12 = vrot.slane %v1108_v46, %v2698_v57 }
 0x16b   : > { %v1259_v14 = vcombine.low %v866_v27, %v870_v8  ;;  %v1260_v6 = vcombine.high %v866_v27, %v870_v8  ;;  %v1191_v15 = vcombine.low %v865_v28, %v869_v44  ;;  %v1192_v16 = vcombine.high %v865_v28, %v869_v44 }
 0x16c   : > { %v1138_v7 = vrot.slane %v1124_v9, %v2698_v57  ;;  %v2757_v54 = vrot.slane %v1107_v11, %v2698_v57  ;;  %v2760_v56 = vrot.slane %v1123_v13, %v2698_v57  ;;  %v1014_v60 = vrot.slane %v1007_v45, %v2688_v48 }
 0x16d   : > { %v1267_v17 = vrot.slane %v1259_v14, %v2688_v48  ;;  %v1274_v18 = vrot.slane %v1260_v6, %v2688_v48  ;;  %v1199_v19 = vrot.slane %v1191_v15, %v2688_v48  ;;  %v1206_v20 = vrot.slane %v1192_v16, %v2688_v48 }
 0x16e   : > { %v1141_v21 = vcombine.low %v1122_v12, %v1138_v7  ;;  %v1140_v23 = vcombine.high %v2757_v54, %v2760_v56  ;;  %v1139_v24 = vcombine.low %v2757_v54, %v2760_v56  ;;  %v1142_v22 = vcombine.high %v1122_v12, %v1138_v7  ;;  %v1478_v54 = vld [vmem:[%s2913_s2 + $0x8] sm:$0xff] }
 0x16f   : > { %v1275_v26 = vcombine.low %v1251_v2, %v1267_v17  ;;  %v1276_v29 = vcombine.high %v1251_v2, %v1267_v17  ;;  %v1291_v35 = vcombine.low %v1258_v3, %v1274_v18  ;;  %v1292_v37 = vcombine.high %v1258_v3, %v1274_v18 }
 0x170   : > { %v1207_v38 = vcombine.low %v1183_v51, %v1199_v19  ;;  %v1208_v39 = vcombine.high %v1183_v51, %v1199_v19  ;;  %v1223_v40 = vcombine.low %v1190_v10, %v1206_v20  ;;  %v1224_v43 = vcombine.high %v1190_v10, %v1206_v20  ;;  %1155 = vrot.lane.b32.xlu1 %v1141_v21, %s2354_s24 }
 0x171   : > { %v1283_v27 = vrot.slane %v1275_v26, %v2698_v57  ;;  %v1290_v28 = vrot.slane %v1276_v29, %v2698_v57  ;;  %v1299_v36 = vrot.slane %v1291_v35, %v2698_v57  ;;  %v1306_v52 = vrot.slane %v1292_v37, %v2698_v57  ;;  %1147 = vrot.lane.b32.xlu0 %v1140_v23, %s2355_s12 }
 0x172   : > { %v1215_v53 = vrot.slane %v1207_v38, %v2698_v57  ;;  %v1222_v55 = vrot.slane %v1208_v39, %v2698_v57  ;;  %v1231_v58 = vrot.slane %v1223_v40, %v2698_v57  ;;  %v1238_v59 = vrot.slane %v1224_v43, %v2698_v57 }
 0x173   : > { %v1022_v61 = vrot.slane %v1970_v47, %v2688_v48  ;;  %v1030_v62 = vrot.slane %v1023_v49, %v2688_v48  ;;  %v1038_v63 = vrot.slane %v1971_v50, %v2688_v48  ;;  %v1379_v0 = vcombine.low %v1283_v27, %v1290_v28 }
 0x174   : > { %1163 = vrot.lane.b32.xlu1 %v1142_v22, %s2356_s25  ;;  %v1976_v45 = vcombine.high %v1283_v27, %v1290_v28  ;;  %v1395_v1 = vcombine.low %v1299_v36, %v1306_v52  ;;  %v1977_v32 = vcombine.high %v1299_v36, %v1306_v52  ;;  %v1311_v8 = vcombine.low %v1215_v53, %v1222_v55  ;;  %v1477_v27 = vld [vmem:[%s2913_s2] sm:$0xff] }
 0x175   : > { %v1039_v34 = vcombine.low %v1014_v60, %v1022_v61  ;;  %v1055_v25 = vcombine.low %v1030_v62, %v1038_v63  ;;  %v1040_v30 = vcombine.high %v1014_v60, %v1022_v61  ;;  %v1056_v47 = vcombine.high %v1030_v62, %v1038_v63  ;;  %2090 = vmatprep.mubr.msk.f32.mxu1 %vm449_vm0, %v1477_v27 }
 0x176   : > { %v1386_v42 = vrot.slane %v1379_v0, %v2688_v48  ;;  %v1394_v49 = vrot.slane %v1976_v45, %v2688_v48  ;;  %v1402_v41 = vrot.slane %v1395_v1, %v2688_v48  ;;  %v1410_v31 = vrot.slane %v1977_v32, %v2688_v48 }
 0x177   : > { %v1047_v33 = vrot.slane %v1039_v34, %v2698_v57  ;;  %v1063_v50 = vrot.slane %v1055_v25, %v2698_v57  ;;  %v1054_v2 = vrot.slane %v1040_v30, %v2698_v57  ;;  %v1070_v3 = vrot.slane %v1056_v47, %v2698_v57 }
 0x178   : > { %v1411_v4 = vcombine.low %v1386_v42, %v1394_v49  ;;  %v1427_v5 = vcombine.low %v1402_v41, %v1410_v31  ;;  %v1974_v44 = vcombine.high %v1215_v53, %v1222_v55  ;;  %v1327_v10 = vcombine.low %v1231_v58, %v1238_v59 }
 0x179   : > { %v1072_v46 = vcombine.high %v1047_v33, %v1063_v50  ;;  %v1073_v9 = vcombine.low %v1054_v2, %v1070_v3  ;;  %v1074_v51 = vcombine.high %v1054_v2, %v1070_v3  ;;  %v1318_v14 = vrot.slane %v1311_v8, %v2688_v48 }
 0x17a   : > { %v2806_v11 = vrot.slane %v1411_v4, %v2698_v57  ;;  %v1435_v13 = vrot.slane %v1427_v5, %v2698_v57  ;;  %v1326_v6 = vrot.slane %v1974_v44, %v2688_v48  ;;  %v1334_v15 = vrot.slane %v1327_v10, %v2688_v48 }
 0x17b   : > { %1145 = vrot.lane.b32.xlu0 %v1072_v46, %s2355_s12  ;;  %1153 = vrot.lane.b32.xlu1 %v1073_v9, %s2354_s24  ;;  %v1975_v16 = vcombine.high %v1231_v58, %v1238_v59  ;;  %v1412_v12 = vcombine.high %v1386_v42, %v1394_v49  ;;  %v1428_v18 = vcombine.high %v1402_v41, %v1410_v31  ;;  %v1979_v9 = vld [vmem:[%s2913_s2 + $0x18] sm:$0xff] }
 0x17c   : > { %v1444_v7 = vcombine.high %v2806_v11, %v1435_v13  ;;  %v1343_v17 = vcombine.low %v1318_v14, %v1326_v6  ;;  %v1344_v19 = vcombine.high %v1318_v14, %v1326_v6  ;;  %v1071_v23 = vcombine.low %v1047_v33, %v1063_v50  ;;  %v1732_v14 = vld [vmem:[#allocation7 + $0x8] sm:$0xff] }
 0x17d   : > { %v1342_v20 = vrot.slane %v1975_v16, %v2688_v48  ;;  %v1426_v21 = vrot.slane %v1412_v12, %v2698_v57  ;;  %v1442_v26 = vrot.slane %v1428_v18, %v2698_v57  ;;  %v1443_v29 = vcombine.low %v2806_v11, %v1435_v13  ;;  %v1731_v16 = vld [vmem:[#allocation7] sm:$0xff] }
 0x17e   : > { %v1351_v22 = vrot.slane %v1343_v17, %v2698_v57  ;;  %v1358_v37 = vrot.slane %v1344_v19, %v2698_v57 }
 0x17f   : > { %1161 = vrot.lane.b32.xlu0 %v1074_v51, %s2356_s25  ;;  %1451 = vrot.lane.b32.xlu1 %v1444_v7, %s2355_s12  ;;  %v1359_v35 = vcombine.low %v1334_v15, %v1342_v20  ;;  %v1360_v38 = vcombine.high %v1334_v15, %v1342_v20  ;;  %v1445_v39 = vcombine.low %v1426_v21, %v1442_v26 }
 0x180   : > { %v1446_v40 = vcombine.high %v1426_v21, %v1442_v26  ;;  %v1645_v51 = vadd.f32 %v1979_v9, %v1478_v54  ;;  %v1744_v21 = vld [vmem:[#allocation7 + $0x18] sm:$0xff]  ;;  %v1743_v26 = vld [vmem:[#allocation7 + $0x10] sm:$0xff] }
 0x181   : > { %v1367_v48 = vrot.slane %v1359_v35, %v2698_v57  ;;  %v1374_v43 = vrot.slane %v1360_v38, %v2698_v57 }
 0x183   : > { %v1376_v28 = vcombine.high %v1351_v22, %v1367_v48  ;;  %1459 = vrot.lane.b32.xlu1 %v1445_v39, %s2354_s24  ;;  %v1377_v36 = vcombine.low %v1358_v37, %v1374_v43  ;;  %v1378_v52 = vcombine.high %v1358_v37, %v1374_v43  ;;  %v1375_v53 = vcombine.low %v1351_v22, %v1367_v48 }
 0x185   : > { %1449 = vrot.lane.b32.xlu0 %v1376_v28, %s2355_s12 }
 0x187   : > { %1467 = vrot.lane.b32.xlu1 %v1446_v40, %s2356_s25 }
 0x189   : > { %1457 = vrot.lane.b32.xlu0 %v1377_v36, %s2354_s24 }
 0x18d   : > { %1465 = vrot.lane.b32.xlu0 %v1378_v52, %s2356_s25 }
 0x1e2   : > { %v1156_v57 = vpop.permute.xlu1 %1155 }
 0x1e3   : > { %v1148_v55 = vpop.permute.xlu0 %1147 }
 0x1e4   : > { %v1169_v61 = vsel %vm1167_vm1, %v1139_v24, %v1148_v55  ;;  %v1978_v24 = vld [vmem:[%s2913_s2 + $0x10] sm:$0xff] }
 0x1e5   : > { %v1171_v0 = vsel %vm449_vm0, %v1169_v61, %v1156_v57  ;;  %v1644_v46 = vadd.f32 %v1978_v24, %v1477_v27 }
 0x1e6   : > { %v1164_v58 = vpop.permute.xlu1 %1163 }
 0x1e7   : > { %v1174_v32 = vsel %vm1172_vm2, %v1171_v0, %v1164_v58 }
 0x1ed   : > { %v1146_v59 = vpop.permute.xlu0 %1145  ;;  %v1154_v60 = vpop.permute.xlu1 %1153 }
 0x1ee   : > { %v1168_v62 = vsel %vm1167_vm1, %v1071_v23, %v1146_v59 }
 0x1ef   : > { %v1170_v63 = vsel %vm449_vm0, %v1168_v62, %v1154_v60 }
 0x1f1   : > { %v1162_v45 = vpop.permute.xlu0 %1161  ;;  %v1452_v1 = vpop.permute.xlu1 %1451 }
 0x1f2   : > { %v1173_v34 = vsel %vm1172_vm2, %v1170_v63, %v1162_v45  ;;  %v1472_v47 = vsel %vm1167_vm1, %v1443_v29, %v1452_v1 }
 0x1f3   : > { %v2119_v25 = vpack.c.bf16 %v1174_v32, %v1173_v34 }
 0x1f5   : > { %2120 = vmatprep.subr.bf16.mxu1 %v2119_v25  ;;  %v1460_v30 = vpop.permute.xlu1 %1459 }
 0x1f6   : > { %2122 = vmatpush3.bf16.msra.mxu1 %v2119_v25  ;;  %v1474_v42 = vsel %vm449_vm0, %v1472_v47, %v1460_v30 }
 0x1f7   : > { %v1450_v56 = vpop.permute.xlu0 %1449 }
 0x1f8   : > { %v1471_v50 = vsel %vm1167_vm1, %v1375_v53, %v1450_v56 }
 0x1f9   : > { %v1468_v49 = vpop.permute.xlu1 %1467  ;;  %2091 = vmatmul.mubr.msk.f32.vlgmr.msra.gmra.mrb[8].mxu1 %vm449_vm0, %v1478_v54 }
 0x1fa   : > { %v1476_v41 = vsel %vm1172_vm2, %v1474_v42, %v1468_v49  ;;  %2097 = vmatprep.mubr.msk.f32.mxu1 %vm449_vm0, %v1978_v24 }
 0x1fb   : > { %v1458_v31 = vpop.permute.xlu0 %1457  ;;  %v1647_v33 = vadd.f32 %v1476_v41, %v1174_v32 }
 0x1fc   : > { %v1473_v2 = vsel %vm449_vm0, %v1471_v50, %v1458_v31 }
 0x1ff   : > { %v1466_v3 = vpop.permute.xlu0 %1465 }
 0x200   : > { %v1475_v4 = vsel %vm1172_vm2, %v1473_v2, %v1466_v3 }
 0x201   : > { %v2123_v5 = vpack.c.bf16 %v1476_v41, %v1475_v4  ;;  %v1646_v8 = vadd.f32 %v1475_v4, %v1173_v34 }
 0x203   : > { %2124 = vmatprep.subr.bf16.mxu1 %v2123_v5  ;;  %v2127_v44 = vpack.c.bf16 %v1647_v33, %v1646_v8 }
 0x204   : > { %2126 = vmatpush3.bf16.msra.mxu1 %v2123_v5 }
 0x205   : > { %2128 = vmatprep.subr.bf16.mxu1 %v2127_v44 }
 0x207   : > { %2098 = vmatmul.mubr.msk.f32.vlgmr.msra.gmra.mrb[10].mxu1 %vm449_vm0, %v1979_v9 }
 0x208   : > { %2130 = vmatpush3.bf16.msra.mxu1 %v2127_v44  ;;  %2104 = vmatprep.mubr.msk.f32.mxu1 %vm449_vm0, %v1644_v46 }
 0x20b   : > { %2105 = vmatmul.mubr.msk.f32.vlgmr.msra.gmra.mrb[12].mxu1 %vm449_vm0, %v1645_v51 }
 0x2cc   : > { %v2092_v10 = vpop.f32.mrb[8].mxu1 }
 0x2cd   : > { %v1554_v11 = vpop.f32.mrb[9].mxu1 }
 0x2da   : > { %v2099_v13 = vpop.f32.mrb[10].mxu1 }
 0x2db   : > { %v1730_v6 = vsub.f32 %v2092_v10, %v2099_v13  ;;  %v1635_v15 = vpop.f32.mrb[11].mxu1 }
 0x2dc   : > { %v1729_v12 = vsub.f32 %v1554_v11, %v1635_v15 }
 0x2dd   : > { %v1734_v7 = vadd.f32 %v1732_v14, %v1730_v6 }
 0x2de   : > { %v1733_v17 = vadd.f32 %v1731_v16, %v1729_v12  ;;  %v2106_v18 = vpop.f32.mrb[12].mxu1 }
 0x2df   : > { %1737 = vst.msk [vmem:[%s372_s29 + $0x8] sm:$0xff] %vm1735_vm3, %v1734_v7  ;;  %v1739_v19 = vsub.f32 %v2106_v18, %v2092_v10  ;;  %v1720_v20 = vpop.f32.mrb[13].mxu1 }
 0x2e0   : > { %1736 = vst.msk [vmem:[%s372_s29] sm:$0xff] %vm1735_vm3, %v1733_v17  ;;  %v1738_v23 = vsub.f32 %v1720_v20, %v1554_v11 }
 0x2e1   : > { %v1741_v22 = vsub.f32 %v1739_v19, %v2099_v13 }
 0x2e2   : > { %v1740_v29 = vsub.f32 %v1738_v23, %v1635_v15 }
 0x2e3   : > { %v1746_v35 = vadd.f32 %v1744_v21, %v1741_v22 }
 0x2e4   : > { %v1745_v37 = vadd.f32 %v1743_v26, %v1740_v29 }
 0x2e5   : > { %1987 = vst.msk [vmem:[%s372_s29 + $0x18] sm:$0xff] %vm1735_vm3, %v1746_v35 }
 0x2e6   : > { %1986 = vst.msk [vmem:[%s372_s29 + $0x10] sm:$0xff] %vm1735_vm3, %v1745_v37 }
 0x2e7   : > { %s1995_s11 = sshll.u32 %s2328_s21, 8  ;;  %s1781_s10 = sshll.u32 %s372_s29, 4  ;;  %s1782_s10 = int_to_ptr.vmem [resolvable:$true] %s1781_s10 }
 0x2e8   : > { %s1764_s24 = scalar_lea.hbm %s2916_s5, %s1995_s11  ;;  %s2357_s12 = smov 256  }
 0x2e9   : > { %p2938_p0 = scmp.ne.s32.totalorder %s2927_s6, 0  ;;  %s2358_s25 = smov 512  }
 0x2ea   : > { %s2359_s7 = smov 2   ;;  %s2360_s17 = smov 128  }
 0x2eb   : > { %2153 = sst [smem:[#allocation14]] (%p2938_p0), %s2357_s12  ;;  %s2361_s21 = smov 8  }
 0x2ec   : > { %2154 = sst [smem:[#allocation14 + $0x1]] (%p2938_p0), %s2358_s25  ;;  %s2362_s28 = smov [#allocation13]  }
 0x2ed   : > { %2155 = sst [smem:[#allocation14 + $0x2]] (%p2938_p0), %s2359_s7  ;;  %s2363_s9 = smov 0  }
 0x2ee   : > { %2156 = sst [smem:[#allocation14 + $0x3]] (%p2938_p0), %s2360_s17 }
 0x2ef   : > { %2157 = sst [smem:[#allocation14 + $0x4]] (%p2938_p0), %s2360_s17 }
 0x2f0   : > { %2158 = sst [smem:[#allocation14 + $0x5]] (%p2938_p0), %s2361_s21 }
 0x2f1   : > { %2159 = dma.general (%p2938_p0), %s1782_s10, 512, %s1764_s24, %s1751_s26, %s2362_s28, [#allocation14], %s2363_s9, 0  }
 0x2f2 PF: > { %s1809_s4 = sand.u32 1, %s2316_s18   ;;  %p2939_p2 = scmp.ne.s32.totalorder %s2929_s8, 0 }
 0x2f3   : > { %s1810_s14 = scalar_lea.sflag [#allocation4], %s1809_s4 }
 0x2f4   : > { %p2166_p6 = pnand %p1918_p3, %p2939_p2 }
 0x2f6   : > { %2311 = dma.done.wait (!%p2166_p6), %s1810_s14, 512  }
 0x2f7   : > { %2313 = vsyncadd (!%p2166_p6), %s1810_s14, 4294966784  ;;  %s24_s23 = sadd.s32 1, %s2336_s23   ;;  %s2940_s13 = sld [smem:[#allocation22_spill]] }
 0x2f8   : > { %p21_p7 = scmp.ge.s32.totalorder %s24_s23, 4   ;;  %s2941_s6 = sld [smem:[#allocation21_spill]] }
 0x2f9   : > { %s2942_s18 = smov %s2320_s19  ;;  %s2943_s19 = smov %s2324_s20 }
 0x2fa   : > { %s2945_s21 = smov %s2332_s22  ;;  %23 = sbr.rel (!%p21_p7) target bundleno = 10 (0xa), region = 124 }
 0x2fd   : > { %s2944_s20 = smov %s2940_s13 }
 0x2fe   : > { %s2946_s22 = smov %s2941_s6 }
 0x301   :  { %1815 = vsyncpa [#allocation3], 1 }
 0x302   :  { %1817 = vsyncpa [#allocation3 + $0x1], 1 }
 0x303   :  { %1818 = vsyncpa [#allocation6], 1 }
 0x304   :  { %1820 = vsyncpa [#allocation6 + $0x1], 1 }
 0x305   :  { %1821 = vsyncpa [#allocation4], 1 }
 0x306   :  { %1823 = vsyncpa [#allocation4 + $0x1], 1 }

</bundles_post_ra>
